<compile_context>
chip_gen: v6e
topology: v6e:2x2x1
jax: 0.10.0
libtpu: 0.0.40
codegen_flags: <defaults>
</compile_context>

<pallas_src>
import jax
import jax.numpy as jnp
from jax.experimental import pallas as pl
from jax.experimental.pallas import tpu as pltpu


# ----------------------------------------------------------------------------
# Kernel
# ----------------------------------------------------------------------------
def _ffn_kernel(x_ref, w1_ref, w3_ref, w2_ref, o_ref, acc_ref):
    # x_ref:   (tm, dim)   bf16
    # w1_ref:  (dim, tn)   bf16  gate-projection tile for hidden block j
    # w3_ref:  (dim, tn)   bf16  up-projection tile for hidden block j
    # w2_ref:  (tn, dim)   bf16  down-projection tile
    # o_ref:   (tm, dim)
    # acc_ref: (tm, dim)   f32 scratch accumulator (resident across j)
    j = pl.program_id(1)

    x = x_ref[...]
    h1 = jnp.dot(x, w1_ref[...], preferred_element_type=jnp.float32)
    h3 = jnp.dot(x, w3_ref[...], preferred_element_type=jnp.float32)
    # SiLU(h1) * h3 in f32 (EUP sigmoid + VPU muls hide under the MXU).
    h = (h1 * jax.nn.sigmoid(h1)) * h3

    partial = jnp.dot(h.astype(w2_ref.dtype), w2_ref[...],
                      preferred_element_type=jnp.float32)

    @pl.when(j == 0)
    def _():
        acc_ref[...] = partial            # first hidden block: assign (no zero-fill)

    @pl.when(j > 0)
    def _():
        acc_ref[...] += partial

    @pl.when(j == pl.num_programs(1) - 1)
    def _():
        o_ref[...] = acc_ref[...].astype(o_ref.dtype)


# ----------------------------------------------------------------------------
# Helpers
# ----------------------------------------------------------------------------
def _round_up(a: int, b: int) -> int:
    return ((a + b - 1) // b) * b


def _cdiv(a: int, b: int) -> int:
    return -(-a // b)


def _pick_hidden_tile(hidden: int, want: int, align: int = 128) -> int:
    """Largest multiple of `align` that divides `hidden` and is <= want."""
    best = align
    t = align
    cap = min(want, hidden)
    while t <= cap:
        if hidden % t == 0:
            best = t
        t += align
    return best


def _tpu_defaults():
    kind = ""
    try:
        kind = jax.devices()[0].device_kind.lower()
    except Exception:
        pass
    if "v7" in kind:
        # 64 MiB physical VMEM per TC; leave headroom for Mosaic scratch.
        return {"vmem_cap": 52 << 20, "tm": 512, "two_cores": True}
    if "v6" in kind:
        # 128 MiB physical; raise the scoped budget so tm=512/tn=512 pipelines.
        return {"vmem_cap": 100 << 20, "tm": 512, "two_cores": False}
    if "v5" in kind:
        # Ridge ~240 flop/byte: tm=256 is already near compute-bound on v5e.
        return {"vmem_cap": 100 << 20, "tm": 256, "two_cores": False}
    return {"vmem_cap": 48 << 20, "tm": 256, "two_cores": False}


def _vmem_bytes(tm: int, tn: int, dim: int, elt: int) -> int:
    return (2 * tm * dim * elt        # x tile (double-buffered)
            + 4 * dim * tn * elt      # w1 + w3 tiles (double-buffered)
            + 2 * tn * dim * elt      # w2 tile (double-buffered)
            + 2 * tm * dim * elt      # out tile (double-buffered)
            + tm * dim * 4)           # f32 accumulator


def prepare_weights(w1, w3, w2, *, param_dtype=jnp.bfloat16, hidden_align=512):
    """One-time (weight-load time) cast + hidden padding. NOT per forward call.

    w1/w3: (dim, hidden); w2: (hidden, dim). Hidden is zero-padded to a
    multiple of `hidden_align` (128 for small hidden) so the kernel keeps a
    full-width hidden tile for awkward sizes. Zero w2 rows keep results exact.
    """
    dim, hidden = w1.shape
    align = hidden_align if hidden >= hidden_align else 128
    hidden_p = _round_up(hidden, align)
    pad = hidden_p - hidden
    w1 = w1.astype(param_dtype)
    w3 = w3.astype(param_dtype)
    w2 = w2.astype(param_dtype)
    if pad:
        w1 = jnp.pad(w1, ((0, 0), (0, pad)))
        w3 = jnp.pad(w3, ((0, 0), (0, pad)))
        w2 = jnp.pad(w2, ((0, pad), (0, 0)))
    return w1, w3, w2


# ----------------------------------------------------------------------------
# Wrapper
# ----------------------------------------------------------------------------
def feed_forward(x, w1, w3, w2, *, tm=None, tn=512):
    """x: (M, dim); w1/w3: (dim, hidden); w2: (hidden, dim) -> (M, dim).

    Weights should come from `prepare_weights` (already bf16, hidden padded);
    they are consumed as-is — no per-call repacking or casting.
    """
    M, dim = x.shape
    hidden = w1.shape[1]
    assert dim % 128 == 0, "dim must be a multiple of 128"
    assert hidden % 128 == 0, "hidden must be a multiple of 128"
    assert w3.shape == (dim, hidden) and w2.shape == (hidden, dim)
    assert w1.dtype == w3.dtype == w2.dtype

    orig_dtype = x.dtype
    param_dtype = w1.dtype
    elt = jnp.dtype(param_dtype).itemsize

    hw = _tpu_defaults()
    vmem_cap = hw["vmem_cap"]
    if tm is None:
        tm = hw["tm"]

    # --- tile selection ------------------------------------------------------
    tm_eff = min(tm, _round_up(M, 16))          # multiple of 16 (bf16 sublanes)
    tn_eff = _pick_hidden_tile(hidden, tn)      # multiple of 128, divides hidden

    # v7x: ensure the parallel axis has >= 2 steps when M permits so both
    # TensorCores get work.
    if hw["two_cores"] and _cdiv(M, tm_eff) == 1 and M >= 32:
        tm_eff = _round_up(_cdiv(M, 2), 16)

    # Shrink tiles until the double-buffered working set fits the VMEM budget
    # (instead of silently clamping the limit below the requirement).
    while _vmem_bytes(tm_eff, tn_eff, dim, elt) * 1.25 > vmem_cap:
        if tn_eff > 256:
            tn_eff = _pick_hidden_tile(hidden, tn_eff // 2)
        elif tm_eff > 256:
            tm_eff = max(256, _round_up(tm_eff // 2, 16))
        elif tn_eff > 128:
            tn_eff = _pick_hidden_tile(hidden, tn_eff // 2)
        elif tm_eff > 16:
            tm_eff = max(16, _round_up(tm_eff // 2, 16))
        else:
            break
    # TODO(synk): for very large dim on v7x, tile the w2 output dim with a 3rd
    # grid axis (keep h in a small scratch) instead of shrinking tm/tn further.

    n_m = _cdiv(M, tm_eff)
    n_j = hidden // tn_eff
    m_pad = n_m * tm_eff

    # --- input prep (x only; weights are pre-prepared) ------------------------
    xk = x.astype(param_dtype)
    if m_pad != M:
        xk = jnp.pad(xk, ((0, m_pad - M), (0, 0)))

    est = _vmem_bytes(tm_eff, tn_eff, dim, elt)
    vmem_limit = int(min(vmem_cap, max(32 << 20, int(est * 1.3))))

    weight_bytes = (2 * dim * hidden + hidden * dim) * elt
    cost = pl.CostEstimate(
        flops=6 * m_pad * dim * hidden,
        transcendentals=m_pad * hidden,
        bytes_accessed=(m_pad * dim * elt           # x in
                        + n_m * weight_bytes        # weights re-streamed per m-tile
                        + m_pad * dim * elt),       # out
    )

    out = pl.pallas_call(
        _ffn_kernel,
        out_shape=jax.ShapeDtypeStruct((m_pad, dim), param_dtype),
        grid_spec=pltpu.PrefetchScalarGridSpec(
            num_scalar_prefetch=0,
            grid=(n_m, n_j),
            in_specs=[
                pl.BlockSpec((tm_eff, dim), lambda i, j: (i, 0)),    # x
                pl.BlockSpec((dim, tn_eff), lambda i, j: (0, j)),    # w1
                pl.BlockSpec((dim, tn_eff), lambda i, j: (0, j)),    # w3
                pl.BlockSpec((tn_eff, dim), lambda i, j: (j, 0)),    # w2
            ],
            out_specs=pl.BlockSpec((tm_eff, dim), lambda i, j: (i, 0)),
            scratch_shapes=[pltpu.VMEM((tm_eff, dim), jnp.float32)],
        ),
        compiler_params=pltpu.CompilerParams(
            dimension_semantics=("parallel", "arbitrary"),
            vmem_limit_bytes=vmem_limit,
        ),
        cost_estimate=cost,
    )(xk, w1, w3, w2)

    if m_pad != M:
        out = out[:M]
    return out.astype(orig_dtype)


# ----------------------------------------------------------------------------
# Module-equivalent helpers + self-test
# ----------------------------------------------------------------------------
def _llama_hidden_dim(dim: int, hidden_dim: int, multiple_of: int) -> int:
    hidden_dim = int(2 * hidden_dim / 3)
    hidden_dim = multiple_of * ((hidden_dim + multiple_of - 1) // multiple_of)
    return hidden_dim


def _init_linear_weight(key, in_features, out_features, dtype=jnp.float32):
    # nn.Linear default init: U(-1/sqrt(fan_in), 1/sqrt(fan_in)).
    # Stored transposed: (in_features, out_features) so forward is x @ W.
    bound = 1.0 / (in_features ** 0.5)
    return jax.random.uniform(key, (in_features, out_features),
                              minval=-bound, maxval=bound, dtype=dtype)


if __name__ == "__main__":
    # Small shapes consistent with the module.
    batch, seq, dim = 2, 8, 128
    multiple_of = 128
    hidden = _llama_hidden_dim(dim, 4 * dim, multiple_of)   # 384

    key = jax.random.PRNGKey(0)
    kx, k1, k2, k3 = jax.random.split(key, 4)

    x = jax.random.normal(kx, (batch, seq, dim), dtype=jnp.float32)
    w1 = _init_linear_weight(k1, dim, hidden)     # torch w1.weight.T
    w3 = _init_linear_weight(k3, dim, hidden)     # torch w3.weight.T
    w2 = _init_linear_weight(k2, hidden, dim)     # torch w2.weight.T

    # One-time weight preparation (cast + optional hidden padding).
    w1p, w3p, w2p = prepare_weights(w1, w3, w2)

    x2d = x.reshape(batch * seq, dim)
    out2d = feed_forward(x2d, w1p, w3p, w2p)
    out = out2d.reshape(batch, seq, dim)
    jax.block_until_ready(out)

    # Pure-JAX reference on the same bf16 compute path (f32 accumulation; the
    # gated activation is deliberately downcast to bf16 before the w2 matmul).
    xb = x2d.astype(jnp.bfloat16)
    h1 = jnp.dot(xb, w1.astype(jnp.bfloat16), preferred_element_type=jnp.float32)
    h3 = jnp.dot(xb, w3.astype(jnp.bfloat16), preferred_element_type=jnp.float32)
    h = (h1 * jax.nn.sigmoid(h1)) * h3
    ref2d = jnp.dot(h.astype(jnp.bfloat16), w2.astype(jnp.bfloat16),
                    preferred_element_type=jnp.float32)
    ref = ref2d.reshape(batch, seq, dim).astype(jnp.float32)

    assert jnp.allclose(out.astype(jnp.float32), ref, atol=2e-2, rtol=2e-2), \
        "mismatch vs reference"

    print("KERNEL_OK")
</pallas_src>

<mosaic_0001>
module attributes {stable_mosaic.version = 11 : i64} {
  func.func @_ffn_kernel(%arg0: i32, %arg1: i32, %arg2: memref<16x128xbf16, #tpu.memory_space<vmem>>, %arg3: memref<128x384xbf16, #tpu.memory_space<vmem>>, %arg4: memref<128x384xbf16, #tpu.memory_space<vmem>>, %arg5: memref<384x128xbf16, #tpu.memory_space<vmem>>, %arg6: memref<16x128xbf16, #tpu.memory_space<vmem>>, %arg7: memref<16x128xf32, #tpu.memory_space<vmem>>) attributes {dimension_semantics = [#tpu.dimension_semantics<parallel>, #tpu.dimension_semantics<arbitrary>], iteration_bounds = array<i64: 1, 1>, scalar_prefetch = 0 : i64, scratch_operands = 1 : i64, tpu.core_type = #tpu.core_type<tc>, window_params = [{transform_indices = @transform_0, window_bounds = array<i64: 16, 128>}, {transform_indices = @transform_1, window_bounds = array<i64: 128, 384>}, {transform_indices = @transform_2, window_bounds = array<i64: 128, 384>}, {transform_indices = @transform_3, window_bounds = array<i64: 384, 128>}, {transform_indices = @transform_4, window_bounds = array<i64: 16, 128>}]} {
    %c0 = arith.constant 0 : index
    %c0_0 = arith.constant 0 : index
    %0 = vector.load %arg2[%c0, %c0_0] : memref<16x128xbf16, #tpu.memory_space<vmem>>, vector<16x128xbf16>
    %c0_1 = arith.constant 0 : index
    %c0_2 = arith.constant 0 : index
    %1 = vector.load %arg3[%c0_1, %c0_2] : memref<128x384xbf16, #tpu.memory_space<vmem>>, vector<128x384xbf16>
    %cst = arith.constant dense<0.000000e+00> : vector<16x384xf32>
    %2 = tpu.matmul %0, %1, %cst {dimension_numbers = #tpu.dot_dimension_numbers<[1], [0], [0], [1], [0, 0, 1, 1], [], []>} : vector<16x128xbf16>, vector<128x384xbf16>, vector<16x384xf32> -> vector<16x384xf32>
    %c0_3 = arith.constant 0 : index
    %c0_4 = arith.constant 0 : index
    %3 = vector.load %arg4[%c0_3, %c0_4] : memref<128x384xbf16, #tpu.memory_space<vmem>>, vector<128x384xbf16>
    %cst_5 = arith.constant dense<0.000000e+00> : vector<16x384xf32>
    %4 = tpu.matmul %0, %3, %cst_5 {dimension_numbers = #tpu.dot_dimension_numbers<[1], [0], [0], [1], [0, 0, 1, 1], [], []>} : vector<16x128xbf16>, vector<128x384xbf16>, vector<16x384xf32> -> vector<16x384xf32>
    %5 = arith.negf %2 : vector<16x384xf32>
    %6 = math.exp %5 : vector<16x384xf32>
    %cst_6 = arith.constant 1.000000e+00 : f32
    %7 = vector.broadcast %cst_6 : f32 to vector<16x384xf32>
    %8 = arith.addf %7, %6 : vector<16x384xf32>
    %9 = arith.divf %7, %8 : vector<16x384xf32>
    %10 = arith.mulf %2, %9 : vector<16x384xf32>
    %11 = arith.mulf %10, %4 : vector<16x384xf32>
    %12 = arith.truncf %11 : vector<16x384xf32> to vector<16x384xbf16>
    %c0_7 = arith.constant 0 : index
    %c0_8 = arith.constant 0 : index
    %13 = vector.load %arg5[%c0_7, %c0_8] : memref<384x128xbf16, #tpu.memory_space<vmem>>, vector<384x128xbf16>
    %cst_9 = arith.constant dense<0.000000e+00> : vector<16x128xf32>
    %14 = tpu.matmul %12, %13, %cst_9 {dimension_numbers = #tpu.dot_dimension_numbers<[1], [0], [0], [1], [0, 0, 1, 1], [], []>} : vector<16x384xbf16>, vector<384x128xbf16>, vector<16x128xf32> -> vector<16x128xf32>
    %c0_i32 = arith.constant 0 : i32
    %15 = arith.cmpi eq, %arg1, %c0_i32 : i32
    %16 = arith.extui %15 : i1 to i32
    %c0_i32_10 = arith.constant 0 : i32
    %17 = arith.cmpi ne, %16, %c0_i32_10 : i32
    scf.if %17 {
      %c0_15 = arith.constant 0 : index
      %c0_16 = arith.constant 0 : index
      %24 = vector.load %arg7[%c0_15, %c0_16] : memref<16x128xf32, #tpu.memory_space<vmem>>, vector<16x128xf32>
      tpu.vector_store %arg7[%c0_15, %c0_16], %14 {strides = array<i32>} : memref<16x128xf32, #tpu.memory_space<vmem>>, vector<16x128xf32>,
    } else {
    }
    %c0_i32_11 = arith.constant 0 : i32
    %18 = arith.cmpi sgt, %arg1, %c0_i32_11 : i32
    %19 = arith.extui %18 : i1 to i32
    %c0_i32_12 = arith.constant 0 : i32
    %20 = arith.cmpi ne, %19, %c0_i32_12 : i32
    scf.if %20 {
      %c0_15 = arith.constant 0 : index
      %c0_16 = arith.constant 0 : index
      %24 = vector.load %arg7[%c0_15, %c0_16] : memref<16x128xf32, #tpu.memory_space<vmem>>, vector<16x128xf32>
      %25 = arith.addf %24, %14 : vector<16x128xf32>
      %c0_17 = arith.constant 0 : index
      %c0_18 = arith.constant 0 : index
      %26 = vector.load %arg7[%c0_17, %c0_18] : memref<16x128xf32, #tpu.memory_space<vmem>>, vector<16x128xf32>
      tpu.vector_store %arg7[%c0_17, %c0_18], %25 {strides = array<i32>} : memref<16x128xf32, #tpu.memory_space<vmem>>, vector<16x128xf32>,
    } else {
    }
    %c0_i32_13 = arith.constant 0 : i32
    %21 = arith.cmpi eq, %arg1, %c0_i32_13 : i32
    %22 = arith.extui %21 : i1 to i32
    %c0_i32_14 = arith.constant 0 : i32
    %23 = arith.cmpi ne, %22, %c0_i32_14 : i32
    scf.if %23 {
      %c0_15 = arith.constant 0 : index
      %c0_16 = arith.constant 0 : index
      %24 = vector.load %arg7[%c0_15, %c0_16] : memref<16x128xf32, #tpu.memory_space<vmem>>, vector<16x128xf32>
      %25 = arith.truncf %24 : vector<16x128xf32> to vector<16x128xbf16>
      %c0_17 = arith.constant 0 : index
      %c0_18 = arith.constant 0 : index
      %26 = vector.load %arg6[%c0_17, %c0_18] : memref<16x128xbf16, #tpu.memory_space<vmem>>, vector<16x128xbf16>
      tpu.vector_store %arg6[%c0_17, %c0_18], %25 {strides = array<i32>} : memref<16x128xbf16, #tpu.memory_space<vmem>>, vector<16x128xbf16>,
    } else {
    }
    return
  }
  func.func @transform_0(%arg0: i32, %arg1: i32) -> (i32, i32) {
    %c0_i32 = arith.constant 0 : i32
    %c0_i32_0 = arith.constant 0 : i32
    return %arg0, %c0_i32 : i32, i32
  }
  func.func @transform_1(%arg0: i32, %arg1: i32) -> (i32, i32) {
    %c0_i32 = arith.constant 0 : i32
    %c0_i32_0 = arith.constant 0 : i32
    return %c0_i32, %arg1 : i32, i32
  }
  func.func @transform_2(%arg0: i32, %arg1: i32) -> (i32, i32) {
    %c0_i32 = arith.constant 0 : i32
    %c0_i32_0 = arith.constant 0 : i32
    return %c0_i32, %arg1 : i32, i32
  }
  func.func @transform_3(%arg0: i32, %arg1: i32) -> (i32, i32) {
    %c0_i32 = arith.constant 0 : i32
    %c0_i32_0 = arith.constant 0 : i32
    return %arg1, %c0_i32 : i32, i32
  }
  func.func @transform_4(%arg0: i32, %arg1: i32) -> (i32, i32) {
    %c0_i32 = arith.constant 0 : i32
    %c0_i32_0 = arith.constant 0 : i32
    return %arg0, %c0_i32 : i32, i32
  }
}

</mosaic_0001>

<bundles_post_ra>
// kernel: tpu_custom_call.1
= control target key start
LH: loop header
LB: loop body
LE: loop exit
PB: predicated region body
PF: predicated region fallthrough
CT: control target
= control target key end

     0   :  { %9 = vsyncpa [#allocation4], 0  ;;  %s1480_s0 = inlined_call_operand.hbm [shape: bf16[16,128], index: 0, kind: input, shape index: {}]   ;;  %s1481_s1 = inlined_call_operand.hbm [shape: bf16[128,384], index: 1, kind: input, shape index: {}]   ;;  %s1482_s2 = inlined_call_operand.hbm [shape: bf16[128,384], index: 2, kind: input, shape index: {}]   ;;  %s1483_s3 = inlined_call_operand.hbm [shape: bf16[384,128], index: 3, kind: input, shape index: {}]   ;;  %s1484_s4 = inlined_call_operand.hbm [shape: bf16[16,128], index: 4, kind: output, shape index: {}]  }
   0x1   :  { %10 = vsyncpa [#allocation7], 0 }
   0x2   :  { %11 = vsyncpa [#allocation10], 0 }
   0x3   :  { %12 = vsyncpa [#allocation5], 0  ;;  %s1375_s15 = smov [#allocation6]  }
   0x4   :  { %s30_s16 = sshll.u32 %s1375_s15, 4  ;;  %s31_s16 = int_to_ptr.vmem [resolvable:$true] %s30_s16 }
   0x5   :  { %s1275_s17 = scalar_lea.vmem %s31_s16, 3072  ;;  %p1280_p1 = scmp.lt.s32.totalorder %s31_s16, %s31_s16 }
   0x6   :  { %p1276_p0 = scmp.ne.s32.totalorder %s31_s16, %s1275_s17  ;;  %p1281_p2 = scmp.lt.s32.totalorder %s1275_s17, %s1275_s17 }
   0x8   :  { %p1282_p3 = por %p1281_p2, %p1280_p1 }
   0xa   :  { %p1283_p4 = pnand %p1282_p3, %p1276_p0 }
   0xc   :  { %1286 = shalt.err (!%p1283_p4)
}
   0xd   :  { %s1376_s18 = smov 192   ;;  %s1377_s19 = smov 12  }
   0xe   :  { %36 = dma.hbm_to_vmem [thread:$0]  %s1481_s1, 3072, %s31_s16, [#allocation7], %s1376_s18, %s1376_s18, %s1377_s19  }
   0xf   :  { %s1378_s22 = smov [#allocation3]  }
  0x10   :  { %s18_s23 = sshll.u32 %s1378_s22, 4  ;;  %s19_s23 = int_to_ptr.vmem [resolvable:$true] %s18_s23 }
  0x11   :  { %s1295_s24 = scalar_lea.vmem %s19_s23, 128  ;;  %p1300_p6 = scmp.lt.s32.totalorder %s19_s23, %s19_s23 }
  0x12   :  { %p1296_p5 = scmp.ne.s32.totalorder %s19_s23, %s1295_s24  ;;  %p1301_p7 = scmp.lt.s32.totalorder %s1295_s24, %s1295_s24 }
  0x14   :  { %p1302_p8 = por %p1301_p7, %p1300_p6 }
  0x16   :  { %p1303_p9 = pnand %p1302_p8, %p1296_p5 }
  0x18   :  { %1306 = shalt.err (!%p1303_p9)
}
  0x19   :  { %s1379_s25 = smov 64   ;;  %s1380_s26 = smov 4  }
  0x1a   :  { %24 = dma.hbm_to_vmem [thread:$0]  %s1480_s0, 128, %s19_s23, [#allocation4], %s1379_s25, %s1379_s25, %s1380_s26  }
  0x1b   :  { %s1381_s1 = smov [#allocation8]   ;;  %s1382_s30 = smov [#allocation9]  }
  0x1c   :  { %s42_s29 = sshll.u32 %s1381_s1, 4  ;;  %s54_s5 = sshll.u32 %s1382_s30, 4  ;;  %s43_s29 = int_to_ptr.vmem [resolvable:$true] %s42_s29  ;;  %s55_s5 = int_to_ptr.vmem [resolvable:$true] %s54_s5 }
  0x1d   :  { %s1315_s6 = scalar_lea.vmem %s43_s29, 3072  ;;  %p1320_p11 = scmp.lt.s32.totalorder %s43_s29, %s43_s29 }
  0x1e   :  { %p1316_p10 = scmp.ne.s32.totalorder %s43_s29, %s1315_s6  ;;  %p1321_p12 = scmp.lt.s32.totalorder %s1315_s6, %s1315_s6 }
  0x20   :  { %p1322_p13 = por %p1321_p12, %p1320_p11 }
  0x22   :  { %p1323_p0 = pnand %p1322_p13, %p1316_p10 }
  0x24   :  { %1326 = shalt.err (!%p1323_p0)
}
  0x25   :  { %48 = dma.hbm_to_vmem [thread:$0]  %s1482_s2, 3072, %s43_s29, [#allocation7], %s1376_s18, %s1376_s18, %s1377_s19  }
  0x26   :  { %s1335_s0 = scalar_lea.vmem %s55_s5, 3072  ;;  %p1340_p2 = scmp.lt.s32.totalorder %s55_s5, %s55_s5 }
  0x27   :  { %p1336_p1 = scmp.ne.s32.totalorder %s55_s5, %s1335_s0  ;;  %p1341_p3 = scmp.lt.s32.totalorder %s1335_s0, %s1335_s0 }
  0x29   :  { %p1342_p4 = por %p1341_p3, %p1340_p2 }
  0x2b   :  { %p1343_p5 = pnand %p1342_p4, %p1336_p1 }
  0x2d   :  { %1346 = shalt.err (!%p1343_p5)
}
  0x2e   :  { %60 = dma.hbm_to_vmem [thread:$0]  %s1483_s3, 3072, %s55_s5, [#allocation10], %s1379_s25, %s1379_s25, %s1380_s26  }
  0x2f   :  { %1367 = dma.done.wait [#allocation4], 128  }
  0x30   :  { %1368 = vsyncadd [#allocation4], 4294967168 }
  0x31   :  { %1369 = dma.done.wait [#allocation7], 6144  }
  0x32   :  { %1370 = vsyncadd [#allocation7], 4294961152 }
  0x33   :  { %1371 = dma.done.wait [#allocation10], 3072  }
  0x34   :  { %1372 = vsyncadd [#allocation10], 4294964224  ;;  %v1383_v0 = vmov 0.0   ;;  %vm1384_vm0 = vmmov 0   ;;  %v1385_v1 = vmov 0   ;;  %v1447_v27 = vld [vmem:[#allocation3] sm:$0xff]  }
  0x35   :  { %1082 = vmatprep.subr.bf16.mxu1 %v1383_v0  ;;  %1098 = vmatprep.mubr.msk.bf16.mxu1 %vm1384_vm0, %v1383_v0  ;;  %v1154_v2 = vld [vmem:[#allocation6 + $0xac] ss:$12 sps:$4 sm:$0xff]   ;;  %v1156_v3 = vld [vmem:[#allocation6 + $0xb0] ss:$12 sps:$4 sm:$0xff]   ;;  %v1157_v4 = vld [vmem:[#allocation6 + $0xa8] ss:$12 sps:$4 sm:$0xff]  }
  0x36   :  { %274 = vmatprep.mubr.bf16.mxu0 %v1385_v1  ;;  %242 = vmatprep.subr.bf16.mxu0 %v1154_v2  ;;  %v1158_v5 = vld [vmem:[#allocation6 + $0x94] ss:$12 sps:$4 sm:$0xff]   ;;  %v1160_v6 = vld [vmem:[#allocation6 + $0x98] ss:$12 sps:$4 sm:$0xff]   ;;  %v1161_v7 = vld [vmem:[#allocation6 + $0x90] ss:$12 sps:$4 sm:$0xff]  }
  0x37   :  { %1083 = vmatpush3.bf16.msra.mxu1 %v1156_v3  ;;  %243 = vmatpush1.bf16.msra.mxu0 %v1157_v4  ;;  %v1162_v8 = vld [vmem:[#allocation6 + $0x7c] ss:$12 sps:$4 sm:$0xff]   ;;  %v1164_v9 = vld [vmem:[#allocation6 + $0x80] ss:$12 sps:$4 sm:$0xff]   ;;  %v1165_v10 = vld [vmem:[#allocation6 + $0x78] ss:$12 sps:$4 sm:$0xff]  }
  0x38   :  { %1084 = vmatprep.subr.bf16.mxu1 %v1383_v0  ;;  %244 = vmatprep.subr.bf16.mxu0 %v1158_v5  ;;  %v1166_v11 = vld [vmem:[#allocation6 + $0x64] ss:$12 sps:$4 sm:$0xff]   ;;  %v1168_v12 = vld [vmem:[#allocation6 + $0x68] ss:$12 sps:$4 sm:$0xff]   ;;  %v1169_v13 = vld [vmem:[#allocation6 + $0x60] ss:$12 sps:$4 sm:$0xff]  }
  0x39   :  { %v1170_v14 = vld [vmem:[#allocation6 + $0x4c] ss:$12 sps:$4 sm:$0xff]   ;;  %v1172_v15 = vld [vmem:[#allocation6 + $0x50] ss:$12 sps:$4 sm:$0xff]   ;;  %v1173_v16 = vld [vmem:[#allocation6 + $0x48] ss:$12 sps:$4 sm:$0xff]  }
  0x3a   :  { %v1174_v17 = vld [vmem:[#allocation6 + $0x34] ss:$12 sps:$4 sm:$0xff]   ;;  %v1176_v18 = vld [vmem:[#allocation6 + $0x38] ss:$12 sps:$4 sm:$0xff]   ;;  %v1177_v19 = vld [vmem:[#allocation6 + $0x30] ss:$12 sps:$4 sm:$0xff]  }
  0x3b   :  { %1085 = vmatpush3.bf16.msra.mxu1 %v1160_v6  ;;  %245 = vmatpush1.bf16.msra.mxu0 %v1161_v7  ;;  %v1178_v20 = vld [vmem:[#allocation6 + $0x1c] ss:$12 sps:$4 sm:$0xff]   ;;  %v1180_v21 = vld [vmem:[#allocation6 + $0x20] ss:$12 sps:$4 sm:$0xff]   ;;  %v1181_v22 = vld [vmem:[#allocation6 + $0x18] ss:$12 sps:$4 sm:$0xff]  }
  0x3c   :  { %1086 = vmatprep.subr.bf16.mxu1 %v1383_v0  ;;  %246 = vmatprep.subr.bf16.mxu0 %v1162_v8  ;;  %v1182_v23 = vld [vmem:[#allocation6 + $0x4] ss:$12 sps:$4 sm:$0xff]   ;;  %v1184_v24 = vld [vmem:[#allocation6 + $0x8] ss:$12 sps:$4 sm:$0xff]   ;;  %v1185_v25 = vld [vmem:[#allocation6] ss:$12 sps:$4 sm:$0xff]  }
  0x3d   :  { %v1189_v26 = vld [vmem:[#allocation8 + $0xac] ss:$12 sps:$4 sm:$0xff]   ;;  %v1190_v28 = vld [vmem:[#allocation8 + $0xb0] ss:$12 sps:$4 sm:$0xff]   ;;  %v1187_v29 = vld [vmem:[#allocation8 + $0xa8] ss:$12 sps:$4 sm:$0xff]  }
  0x3e   :  { %v1193_v30 = vld [vmem:[#allocation8 + $0x94] ss:$12 sps:$4 sm:$0xff]   ;;  %v1194_v31 = vld [vmem:[#allocation8 + $0x98] ss:$12 sps:$4 sm:$0xff]   ;;  %v1191_v32 = vld [vmem:[#allocation8 + $0x90] ss:$12 sps:$4 sm:$0xff]  }
  0x3f   :  { %1087 = vmatpush3.bf16.msra.mxu1 %v1164_v9  ;;  %247 = vmatpush1.bf16.msra.mxu0 %v1165_v10  ;;  %v1197_v33 = vld [vmem:[#allocation8 + $0x7c] ss:$12 sps:$4 sm:$0xff]   ;;  %v1195_v34 = vld [vmem:[#allocation8 + $0x78] ss:$12 sps:$4 sm:$0xff]   ;;  %v1198_v35 = vld [vmem:[#allocation8 + $0x80] ss:$12 sps:$4 sm:$0xff]  }
  0x40   :  { %1088 = vmatprep.subr.bf16.mxu1 %v1383_v0  ;;  %248 = vmatprep.subr.bf16.mxu0 %v1166_v11  ;;  %v1201_v36 = vld [vmem:[#allocation8 + $0x64] ss:$12 sps:$4 sm:$0xff]   ;;  %v1202_v37 = vld [vmem:[#allocation8 + $0x68] ss:$12 sps:$4 sm:$0xff]   ;;  %v1199_v38 = vld [vmem:[#allocation8 + $0x60] ss:$12 sps:$4 sm:$0xff]  }
  0x41   :  { %v1205_v39 = vld [vmem:[#allocation8 + $0x4c] ss:$12 sps:$4 sm:$0xff]   ;;  %v1206_v40 = vld [vmem:[#allocation8 + $0x50] ss:$12 sps:$4 sm:$0xff]   ;;  %v1203_v41 = vld [vmem:[#allocation8 + $0x48] ss:$12 sps:$4 sm:$0xff]  }
  0x42   :  { %v1209_v42 = vld [vmem:[#allocation8 + $0x34] ss:$12 sps:$4 sm:$0xff]   ;;  %v1210_v43 = vld [vmem:[#allocation8 + $0x38] ss:$12 sps:$4 sm:$0xff]   ;;  %v1207_v44 = vld [vmem:[#allocation8 + $0x30] ss:$12 sps:$4 sm:$0xff]  }
  0x43   :  { %1089 = vmatpush3.bf16.msra.mxu1 %v1168_v12  ;;  %249 = vmatpush1.bf16.msra.mxu0 %v1169_v13  ;;  %v1213_v45 = vld [vmem:[#allocation8 + $0x1c] ss:$12 sps:$4 sm:$0xff]   ;;  %v1214_v46 = vld [vmem:[#allocation8 + $0x20] ss:$12 sps:$4 sm:$0xff]   ;;  %v1211_v47 = vld [vmem:[#allocation8 + $0x18] ss:$12 sps:$4 sm:$0xff]  }
  0x44   :  { %1090 = vmatprep.subr.bf16.mxu1 %v1383_v0  ;;  %250 = vmatprep.subr.bf16.mxu0 %v1170_v14  ;;  %v1217_v48 = vld [vmem:[#allocation8 + $0x4] ss:$12 sps:$4 sm:$0xff]   ;;  %v1218_v49 = vld [vmem:[#allocation8 + $0x8] ss:$12 sps:$4 sm:$0xff]   ;;  %v1215_v50 = vld [vmem:[#allocation8] ss:$12 sps:$4 sm:$0xff]  }
  0x45   :  { %v1219_v51 = vld [vmem:[#allocation9 + $0xb8] sm:$0xff]   ;;  %v1222_v54 = vld [vmem:[#allocation9 + $0xb0] sm:$0xff]   ;;  %v1225_v57 = vld [vmem:[#allocation9 + $0xa8] sm:$0xff]   ;;  %s1386_s2 = smov [#allocation11]  }
  0x46   :  { %v1220_v52 = vld [vmem:[#allocation9 + $0x78] sm:$0xff]   ;;  %v1223_v55 = vld [vmem:[#allocation9 + $0x70] sm:$0xff]   ;;  %v1226_v58 = vld [vmem:[#allocation9 + $0x68] sm:$0xff]   ;;  %s931_s3 = sshll.u32 %s1386_s2, 4  ;;  %s932_s3 = int_to_ptr.vmem [resolvable:$true] %s931_s3 }
  0x47   :  { %1091 = vmatpush3.bf16.msra.mxu1 %v1172_v15  ;;  %251 = vmatpush1.bf16.msra.mxu0 %v1173_v16  ;;  %v1221_v53 = vld [vmem:[#allocation9 + $0x38] sm:$0xff]   ;;  %v1224_v56 = vld [vmem:[#allocation9 + $0x30] sm:$0xff]   ;;  %v1227_v59 = vld [vmem:[#allocation9 + $0x28] sm:$0xff]   ;;  %s1347_s11 = scalar_lea.vmem %s932_s3, 128  ;;  %p1352_p7 = scmp.lt.s32.totalorder %s932_s3, %s932_s3 }
  0x48   :  { %1092 = vmatprep.subr.bf16.mxu1 %v1383_v0  ;;  %252 = vmatprep.subr.bf16.mxu0 %v1174_v17  ;;  %v1228_v60 = vld [vmem:[#allocation9 + $0xa0] sm:$0xff]   ;;  %v1231_v63 = vld [vmem:[#allocation9 + $0x98] sm:$0xff]   ;;  %v1234_v3 = vld [vmem:[#allocation9 + $0x90] sm:$0xff]   ;;  %p1348_p6 = scmp.ne.s32.totalorder %s932_s3, %s1347_s11  ;;  %p1353_p8 = scmp.lt.s32.totalorder %s1347_s11, %s1347_s11 }
  0x49   :  { %v1229_v61 = vld [vmem:[#allocation9 + $0x60] sm:$0xff]   ;;  %v1233_v2 = vld [vmem:[#allocation9 + $0x18] sm:$0xff]   ;;  %v1235_v4 = vld [vmem:[#allocation9 + $0x50] sm:$0xff]  }
  0x4a   :  { %v1230_v62 = vld [vmem:[#allocation9 + $0x20] sm:$0xff]   ;;  %v1236_v5 = vld [vmem:[#allocation9 + $0x10] sm:$0xff]   ;;  %v1237_v6 = vld [vmem:[#allocation9 + $0x88] sm:$0xff]   ;;  %p1354_p9 = por %p1353_p8, %p1352_p7 }
  0x4b   :  { %1093 = vmatpush3.bf16.msra.mxu1 %v1176_v18  ;;  %253 = vmatpush1.bf16.msra.mxu0 %v1177_v19  ;;  %v1238_v7 = vld [vmem:[#allocation9 + $0x48] sm:$0xff]   ;;  %v1240_v9 = vld [vmem:[#allocation9 + $0x80] sm:$0xff]  }
  0x4c   :  { %1094 = vmatprep.subr.bf16.mxu1 %v1383_v0  ;;  %254 = vmatprep.subr.bf16.mxu0 %v1178_v20  ;;  %v1239_v8 = vld [vmem:[#allocation9 + $0x8] sm:$0xff]   ;;  %v1241_v10 = vld [vmem:[#allocation9 + $0x40] sm:$0xff]   ;;  %p1355_p10 = pnand %p1354_p9, %p1348_p6 }
  0x4d   :  { %v1242_v11 = vld [vmem:[#allocation9] sm:$0xff]  }
  0x4f   :  { %1095 = vmatpush3.bf16.msra.mxu1 %v1180_v21  ;;  %255 = vmatpush1.bf16.msra.mxu0 %v1181_v22 }
  0x50   :  { %1096 = vmatprep.subr.bf16.mxu1 %v1383_v0  ;;  %256 = vmatprep.subr.bf16.mxu0 %v1182_v23 }
  0x53   :  { %1097 = vmatpush3.bf16.msra.mxu1 %v1184_v24  ;;  %257 = vmatpush1.bf16.msra.mxu0 %v1185_v25 }
  0x54   :  { %1102 = vmatprep.subr.bf16.mxu1 %v1383_v0  ;;  %486 = vmatprep.subr.bf16.mxu0 %v1189_v26 }
  0x56   :  { %1099 = vmatmul.mubr.bf16.vlgmr.msra.gmra.mxu1 %v1447_v27  ;;  %275 = vmatmul.mubr.bf16.vlgmr.msra.gmra.mxu0 %v1447_v27 }
  0x57   :  { %1103 = vmatpush3.bf16.msra.mxu1 %v1190_v28  ;;  %487 = vmatpush1.bf16.msra.mxu0 %v1187_v29 }
  0x58   :  { %1104 = vmatprep.subr.bf16.mxu1 %v1383_v0  ;;  %488 = vmatprep.subr.bf16.mxu0 %v1193_v30 }
  0x59   :  { %518 = vmatprep.mubr.bf16.mxu0 %v1385_v1  ;;  %1118 = vmatprep.mubr.msk.bf16.mxu1 %vm1384_vm0, %v1383_v0  ;;  %v1232_v1 = vld [vmem:[#allocation9 + $0x58] sm:$0xff]  }
  0x5b   :  { %1105 = vmatpush3.bf16.msra.mxu1 %v1194_v31  ;;  %489 = vmatpush1.bf16.msra.mxu0 %v1191_v32 }
  0x5c   :  { %1106 = vmatprep.subr.bf16.mxu1 %v1383_v0  ;;  %490 = vmatprep.subr.bf16.mxu0 %v1197_v33 }
  0x5f   :  { %1107 = vmatpush3.bf16.msra.mxu1 %v1198_v35  ;;  %491 = vmatpush1.bf16.msra.mxu0 %v1195_v34 }
  0x60   :  { %1108 = vmatprep.subr.bf16.mxu1 %v1383_v0  ;;  %492 = vmatprep.subr.bf16.mxu0 %v1201_v36 }
  0x63   :  { %1109 = vmatpush3.bf16.msra.mxu1 %v1202_v37  ;;  %493 = vmatpush1.bf16.msra.mxu0 %v1199_v38 }
  0x64   :  { %1110 = vmatprep.subr.bf16.mxu1 %v1383_v0  ;;  %494 = vmatprep.subr.bf16.mxu0 %v1205_v39 }
  0x67   :  { %1111 = vmatpush3.bf16.msra.mxu1 %v1206_v40  ;;  %495 = vmatpush1.bf16.msra.mxu0 %v1203_v41 }
  0x68   :  { %1112 = vmatprep.subr.bf16.mxu1 %v1383_v0  ;;  %496 = vmatprep.subr.bf16.mxu0 %v1209_v42 }
  0x6b   :  { %1113 = vmatpush3.bf16.msra.mxu1 %v1210_v43  ;;  %497 = vmatpush1.bf16.msra.mxu0 %v1207_v44 }
  0x6c   :  { %1114 = vmatprep.subr.bf16.mxu1 %v1383_v0  ;;  %498 = vmatprep.subr.bf16.mxu0 %v1213_v45 }
  0x6f   :  { %1115 = vmatpush3.bf16.msra.mxu1 %v1214_v46  ;;  %499 = vmatpush1.bf16.msra.mxu0 %v1211_v47 }
  0x70   :  { %1116 = vmatprep.subr.bf16.mxu1 %v1383_v0  ;;  %500 = vmatprep.subr.bf16.mxu0 %v1217_v48 }
  0x73   :  { %1117 = vmatpush3.bf16.msra.mxu1 %v1218_v49  ;;  %501 = vmatpush1.bf16.msra.mxu0 %v1215_v50 }
  0x74   :  { %1122 = vmatprep.subr.bf16.mxu1 %v1383_v0  ;;  %1051 = vmatprep.subr.bf16.mxu0 %v1220_v52 }
  0x76   :  { %1119 = vmatmul.mubr.bf16.vlgmr.msra.gmra.mxu1 %v1447_v27  ;;  %519 = vmatmul.mubr.bf16.vlgmr.msra.gmra.mxu0 %v1447_v27 }
  0x77   :  { %1138 = vmatprep.mubr.msk.bf16.mxu1 %vm1384_vm0, %v1383_v0  ;;  %1123 = vmatpush3.bf16.msra.mxu1 %v1219_v51 }
  0x78   :  { %1124 = vmatprep.subr.bf16.mxu1 %v1383_v0  ;;  %1052 = vmatpush3.bf16.msra.mxu0 %v1221_v53 }
  0x79   :  { %1053 = vmatprep.subr.bf16.mxu0 %v1223_v55 }
  0x7b   :  { %1125 = vmatpush3.bf16.msra.mxu1 %v1222_v54 }
  0x7c   :  { %1126 = vmatprep.subr.bf16.mxu1 %v1383_v0  ;;  %1054 = vmatpush3.bf16.msra.mxu0 %v1224_v56 }
  0x7d   :  { %1055 = vmatprep.subr.bf16.mxu0 %v1226_v58 }
  0x7f   :  { %1127 = vmatpush3.bf16.msra.mxu1 %v1225_v57 }
  0x80   :  { %1128 = vmatprep.subr.bf16.mxu1 %v1383_v0  ;;  %1056 = vmatpush3.bf16.msra.mxu0 %v1227_v59 }
  0x81   :  { %1057 = vmatprep.subr.bf16.mxu0 %v1229_v61 }
  0x83   :  { %1129 = vmatpush3.bf16.msra.mxu1 %v1228_v60 }
  0x84   :  { %1130 = vmatprep.subr.bf16.mxu1 %v1383_v0  ;;  %1058 = vmatpush3.bf16.msra.mxu0 %v1230_v62 }
  0x85   :  { %1059 = vmatprep.subr.bf16.mxu0 %v1232_v1 }
  0x87   :  { %1131 = vmatpush3.bf16.msra.mxu1 %v1231_v63 }
  0x88   :  { %1132 = vmatprep.subr.bf16.mxu1 %v1383_v0  ;;  %1060 = vmatpush3.bf16.msra.mxu0 %v1233_v2 }
  0x89   :  { %1061 = vmatprep.subr.bf16.mxu0 %v1235_v4 }
  0x8b   :  { %1133 = vmatpush3.bf16.msra.mxu1 %v1234_v3 }
  0x8c   :  { %1134 = vmatprep.subr.bf16.mxu1 %v1383_v0  ;;  %1062 = vmatpush3.bf16.msra.mxu0 %v1236_v5 }
  0x8d   :  { %1063 = vmatprep.subr.bf16.mxu0 %v1238_v7 }
  0x8f   :  { %1135 = vmatpush3.bf16.msra.mxu1 %v1237_v6 }
  0x90   :  { %1136 = vmatprep.subr.bf16.mxu1 %v1383_v0  ;;  %1064 = vmatpush3.bf16.msra.mxu0 %v1239_v8 }
  0x91   :  { %1065 = vmatprep.subr.bf16.mxu0 %v1241_v10 }
  0x93   :  { %1137 = vmatpush3.bf16.msra.mxu1 %v1240_v9 }
  0x94   :  { %1066 = vmatpush3.bf16.msra.mxu0 %v1242_v11 }
 0x116   :  { %v319_v12 = vpop.f32.mrf.mxu1  ;;  %v276_v14 = vpop.f32.mrf.mxu0 }
 0x117   :  { %v996_v13 = vmul.f32 -1.442695, %v319_v12  ;;  %v994_v15 = vmul.f32 -1.442695, %v276_v14 }
 0x118   :  { %v1100_v16 = vpop.f32.mrf.mxu1  ;;  %v278_v17 = vpop.f32.mrf.mxu0 }
 0x119   :  { %1243 = vpow2.f32 %v996_v13  ;;  %v995_v18 = vmul.f32 -1.442695, %v278_v17 }
 0x11a   :  { %1245 = vpow2.f32 %v994_v15  ;;  %v322_v19 = vpop.f32.mrf.mxu1  ;;  %v280_v20 = vpop.f32.mrf.mxu0 }
 0x11b   :  { %v999_v0 = vmul.f32 -1.442695, %v322_v19  ;;  %1247 = vpow2.f32 %v995_v18  ;;  %v997_v21 = vmul.f32 -1.442695, %v280_v20 }
 0x11c   :  { %v1101_v22 = vpop.f32.mrf.mxu1  ;;  %v282_v23 = vpop.f32.mrf.mxu0 }
 0x11d   :  { %1249 = vpow2.f32 %v999_v0  ;;  %v998_v24 = vmul.f32 -1.442695, %v282_v23 }
 0x11e   :  { %1251 = vpow2.f32 %v997_v21 }
 0x11f   :  { %1253 = vpow2.f32 %v998_v24 }
 0x126   :  { %v1244_v25 = vpop.eup %1243 }
 0x127   :  { %v1246_v26 = vpop.eup %1245  ;;  %v590_v27 = vadd.f32 1.0, %v1244_v25 }
 0x128   :  { %v588_v28 = vadd.f32 1.0, %v1246_v26  ;;  %v1248_v29 = vpop.eup %1247 }
 0x129   :  { %1255 = vrcp.f32 %v590_v27  ;;  %v589_v31 = vadd.f32 1.0, %v1248_v29 }
 0x12a   :  { %v1250_v30 = vpop.eup %1249  ;;  %1257 = vrcp.f32 %v588_v28 }
 0x12b   :  { %v1252_v32 = vpop.eup %1251  ;;  %v593_v33 = vadd.f32 1.0, %v1250_v30  ;;  %1259 = vrcp.f32 %v589_v31 }
 0x12c   :  { %v591_v34 = vadd.f32 1.0, %v1252_v32  ;;  %v1254_v35 = vpop.eup %1253 }
 0x12d   :  { %1261 = vrcp.f32 %v593_v33  ;;  %v592_v36 = vadd.f32 1.0, %v1254_v35 }
 0x12e   :  { %1263 = vrcp.f32 %v591_v34 }
 0x12f   :  { %1265 = vrcp.f32 %v592_v36 }
 0x136   :  { %v1256_v37 = vpop.eup %1255  ;;  %v563_v38 = vpop.f32.mrf.mxu1 }
 0x137   :  { %v520_v39 = vpop.f32.mrf.mxu0  ;;  %v1258_v40 = vpop.eup %1257  ;;  %v608_v43 = vmul.f32 %v1256_v37, %v319_v12 }
 0x138   :  { %v1120_v41 = vpop.f32.mrf.mxu1  ;;  %v1260_v42 = vpop.eup %1259  ;;  %v606_v54 = vmul.f32 %v1258_v40, %v276_v14 }
 0x139   :  { %v522_v44 = vpop.f32.mrf.mxu0  ;;  %v607_v50 = vmul.f32 %v1260_v42, %v278_v17  ;;  %v614_v55 = vmul.f32 %v608_v43, %v563_v38 }
 0x13a   :  { %v1262_v45 = vpop.eup %1261  ;;  %v566_v46 = vpop.f32.mrf.mxu1  ;;  %v612_v63 = vmul.f32 %v606_v54, %v520_v39 }
 0x13b   :  { %v1264_v47 = vpop.eup %1263  ;;  %v611_v48 = vmul.f32 %v1262_v45, %v322_v19  ;;  %v524_v49 = vpop.f32.mrf.mxu0  ;;  %v613_v61 = vmul.f32 %v607_v50, %v522_v44 }
 0x13c   :  { %v609_v51 = vmul.f32 %v1264_v47, %v280_v20  ;;  %v1121_v52 = vpop.f32.mrf.mxu1  ;;  %v1266_v53 = vpop.eup %1265 }
 0x13d   :  { %v617_v56 = vmul.f32 %v611_v48, %v566_v46  ;;  %v610_v57 = vmul.f32 %v1266_v53, %v282_v23  ;;  %v526_v60 = vpop.f32.mrf.mxu0 }
 0x13e   :  { %v615_v58 = vmul.f32 %v609_v51, %v524_v49 }
 0x13f   :  { %v620_v59 = vpack.c.bf16 %v617_v56, %v614_v55  ;;  %v616_v62 = vmul.f32 %v610_v57, %v526_v60 }
 0x140   :  { %v618_v2 = vpack.c.bf16 %v615_v58, %v612_v63 }
 0x141   :  { %1139 = vmatmul.mubr.bf16.vlgmr.msra.gmra.mxu1 %v620_v59  ;;  %v619_v1 = vpack.c.bf16 %v616_v62, %v613_v61 }
 0x143   :  { %845 = vmatprep.mubr.bf16.mxu0 %v619_v1 }
 0x144   :  { %846 = vmatmul.mubr.bf16.vlgmr.msra.gmra.mxu0 %v618_v2 }
 0x201   :  { %v888_v3 = vpop.f32.mrf.mxu1 }
 0x203   :  { %v1140_v4 = vpop.f32.mrf.mxu1 }
 0x204   :  { %v1067_v5 = vpop.f32.mrf.mxu0 }
 0x205   :  { %v891_v6 = vpop.f32.mrf.mxu1 }
 0x206   :  { %v1068_v7 = vpop.f32.mrf.mxu0 }
 0x207   :  { %v1141_v8 = vpop.f32.mrf.mxu1  ;;  %v1069_v10 = vadd.f32 %v1068_v7, %v1067_v5 }
 0x208   :  { %v1070_v9 = vpop.f32.mrf.mxu0 }
 0x209   :  { %v889_v13 = vadd.f32 %v1069_v10, %v888_v3 }
 0x20a   :  { %v1071_v11 = vpop.f32.mrf.mxu0 }
 0x20b   :  { %v1072_v12 = vadd.f32 %v1071_v11, %v1070_v9 }
 0x20d   :  { %v892_v14 = vadd.f32 %v1072_v12, %v891_v6 }
 0x20f   :  { %v1031_v15 = vpack.c.bf16 %v892_v14, %v889_v13 }
 0x211   :  { %1032 = vst [vmem:[#allocation11] sm:$0xff] %v1031_v15  }
 0x212   :  { %1358 = shalt.err (!%p1355_p10)
}
 0x213   :  { %937 = dma.vmem_to_hbm [thread:$0]  %s932_s3, 128, %s1484_s4, [#allocation5], %s1379_s25, %s1379_s25, %s1380_s26  }
 0x214   :  { %1373 = dma.done.wait [#allocation5], 128  }
 0x215   :  { %1374 = vsyncadd [#allocation5], 4294967168 }
 0x216   :  { %941 = vsyncpa [#allocation4], 1 }
 0x217   :  { %942 = vsyncpa [#allocation7], 1 }
 0x218   :  { %943 = vsyncpa [#allocation10], 1 }
 0x219   :  { %944 = vsyncpa [#allocation5], 1 }

</bundles_post_ra>
